<compile_context>
chip_gen: v7x
topology: tpu7x:2x2x1
jax: 0.10.0
libtpu: 0.0.40
codegen_flags: <defaults>
</compile_context>

<pallas_src>
import numpy as np
import jax
import jax.numpy as jnp
from jax.experimental import pallas as pl
from jax.experimental.pallas import tpu as pltpu


# ---------------------------------------------------------------- operator builders

def _pool_matrix(size, k):
    """Non-overlapping avg-pool operator (kernel=k, stride=k, padding=0): (n_out, size)."""
    n_out = (size - k) // k + 1
    m = np.zeros((n_out, size), dtype=np.float32)
    for p in range(n_out):
        m[p, p * k:p * k + k] = 1.0 / k
    return m


def _upsample_matrix(out_size, in_size):
    """1-D bilinear interpolation operator with align_corners=True: (out_size, in_size)."""
    m = np.zeros((out_size, in_size), dtype=np.float32)
    if in_size == 1:
        m[:, 0] = 1.0
        return m
    scale = (in_size - 1) / (out_size - 1)
    for i in range(out_size):
        s = i * scale
        i0 = min(int(np.floor(s)), in_size - 2)
        frac = s - i0
        m[i, i0] = 1.0 - frac
        m[i, i0 + 1] = frac
    return m


def _k_sizes(H, W, levels):
    """Replicates the torch.linspace-based kernel-size selection of the module."""
    pool_sizes = np.linspace(1.0, min(H, W) // 2, levels, dtype=np.float32)
    return [(int(H / ps), int(W / ps)) for ps in pool_sizes][::-1]


# ---------------------------------------------------------------- Pallas kernel

def _make_kernel(levels, hw_pad, neg_slope=0.1):
    def kernel(x_ref, pt_ref, w_ref, bias_ref, ut_ref, out_ref):
        x_f32 = x_ref[...]                                   # (N, S) f32
        x_bf = x_f32.astype(jnp.bfloat16)

        # All levels' avg-pools as ONE lane-dense bf16 MXU matmul:
        # (N, S) @ (S, levels*hw_pad) -> (N, levels*hw_pad), f32 accumulation.
        pooled = jnp.dot(x_bf, pt_ref[...], preferred_element_type=jnp.float32)

        acc = 0.5 * x_f32                                    # residual term of pp_sum/2
        for l in range(levels):                              # static unroll, levels is small
            p_l = pooled[:, l * hw_pad:(l + 1) * hw_pad]     # (N, hw_pad)
            # 1x1 conv == (batch,channel)-row mix; BN scale pre-folded into w_ref.
            y = jnp.dot(w_ref[l], p_l, preferred_element_type=jnp.float32)
            y = y + bias_ref[l]                              # folded BN bias, (N,1) broadcast
            y = jnp.where(y > 0, y, neg_slope * y)           # LeakyReLU(0.1)
            # bilinear upsample (align_corners=True); 0.5/levels pre-folded into ut_ref.
            acc = acc + jnp.dot(y, ut_ref[l], preferred_element_type=jnp.float32)

        out_ref[...] = jnp.where(acc > 0, acc, neg_slope * acc)   # final LeakyReLU(0.1)

    return kernel


# ---------------------------------------------------------------- wrapper (glue)

def pyramid_pooling_forward(x_nchw, conv_w, bn_gamma, bn_beta, bn_mean, bn_var,
                            levels=4, eps=1e-5):
    B, C, H, W = x_nchw.shape
    S = H * W
    N = B * C
    k_sizes = _k_sizes(H, W, levels)

    # per-level compact spatial operators
    # TODO(synk): for large H,W switch to separable per-axis (Ph/Pw, Uh/Uw) matmuls; the
    # dense kron operators grow as (H*W)^2 and would not fit v7x VMEM at H=W>=64.
    p_list, u_list = [], []
    for (kh, kw) in k_sizes:
        ph, pw = _pool_matrix(H, kh), _pool_matrix(W, kw)
        uh, uw = _upsample_matrix(H, ph.shape[0]), _upsample_matrix(W, pw.shape[0])
        p_list.append(np.kron(ph, pw))                       # (hw_l, S)
        u_list.append(np.kron(uh, uw))                       # (S, hw_l)
    hw_max = max(p.shape[0] for p in p_list)
    hw_pad = max(8, ((hw_max + 7) // 8) * 8)                 # sublane-aligned pooled width

    # stacked / compact operators (padded pooled columns hit all-zero Ut rows -> exact)
    pt_all = np.zeros((S, levels * hw_pad), np.float32)      # pooled = x @ pt_all
    ut_all = np.zeros((levels, hw_pad, S), np.float32)       # up_l   = y_l @ ut_all[l]
    for l in range(levels):
        hw = p_list[l].shape[0]
        pt_all[:, l * hw_pad:l * hw_pad + hw] = p_list[l].T
        ut_all[l, :hw, :] = u_list[l].T * (0.5 / levels)     # fold 1/levels and final /2

    # Fold 1x1 conv + BatchNorm (inference, running stats) into a per-level (N, N)
    # row-mix matrix (BN scale folded into the conv rows) and a per-row bias.
    conv_w = np.asarray(conv_w, np.float32)                  # (levels, C_out, C_in)
    gamma = np.asarray(bn_gamma, np.float32)
    beta = np.asarray(bn_beta, np.float32)
    mean = np.asarray(bn_mean, np.float32)
    var = np.asarray(bn_var, np.float32)
    scale_c = gamma / np.sqrt(var + eps)                     # (levels, C)
    bias_c = beta - mean * scale_c                           # (levels, C)
    w_all = np.stack([np.kron(np.eye(B, dtype=np.float32),
                              scale_c[l][:, None] * conv_w[l])
                      for l in range(levels)]).astype(np.float32)          # (levels, N, N)
    bias_all = np.stack([np.tile(bias_c[l], B) for l in range(levels)])    # (levels, N)
    bias_all = bias_all[:, :, None].astype(np.float32)                     # (levels, N, 1)

    # NCHW -> lane-dense (N, S): rows = (b, c), cols = (h, w) -- a pure reshape.
    x2d = x_nchw.astype(jnp.float32).reshape(N, S)

    vmem = pl.BlockSpec(memory_space=pltpu.MemorySpace.VMEM)
    out2d = pl.pallas_call(
        _make_kernel(levels, hw_pad),
        out_shape=jax.ShapeDtypeStruct((N, S), jnp.float32),
        in_specs=[vmem, vmem, vmem, vmem, vmem],
        out_specs=vmem,
    )(
        x2d,
        jnp.asarray(pt_all, dtype=jnp.bfloat16),   # avg-pool weights are powers of 2: exact in bf16
        jnp.asarray(w_all),                        # conv/BN fold kept in f32 (tiny)
        jnp.asarray(bias_all),
        jnp.asarray(ut_all),                       # bilinear fractions kept in f32
    )

    return out2d.reshape(B, C, H, W)


# ---------------------------------------------------------------- numpy reference
# Independent of the kron-operator construction: direct avg_pool2d + bilinear
# interpolation (align_corners=True), computed in float64.

def _avg_pool2d_np(x, kh, kw):
    B, C, H, W = x.shape
    oh, ow = (H - kh) // kh + 1, (W - kw) // kw + 1
    out = np.zeros((B, C, oh, ow), x.dtype)
    for i in range(oh):
        for j in range(ow):
            out[:, :, i, j] = x[:, :, i * kh:i * kh + kh,
                                j * kw:j * kw + kw].mean(axis=(2, 3))
    return out


def _bilinear_up_np(x, H, W):
    """F.interpolate(x, size=(H, W), mode='bilinear', align_corners=True)."""
    B, C, h, w = x.shape
    out = np.zeros((B, C, H, W), x.dtype)
    for i in range(H):
        if h == 1:
            i0, i1, fi = 0, 0, 0.0
        else:
            si = i * (h - 1) / (H - 1)
            i0 = min(int(np.floor(si)), h - 2)
            fi = si - i0
            i1 = i0 + 1
        for j in range(W):
            if w == 1:
                j0, j1, fj = 0, 0, 0.0
            else:
                sj = j * (w - 1) / (W - 1)
                j0 = min(int(np.floor(sj)), w - 2)
                fj = sj - j0
                j1 = j0 + 1
            out[:, :, i, j] = ((1 - fi) * (1 - fj) * x[:, :, i0, j0]
                               + (1 - fi) * fj * x[:, :, i0, j1]
                               + fi * (1 - fj) * x[:, :, i1, j0]
                               + fi * fj * x[:, :, i1, j1])
    return out


def _reference_numpy(x_nchw, conv_w, gamma, beta, mean, var, levels=4, eps=1e-5):
    x = np.asarray(x_nchw, np.float64)
    B, C, H, W = x.shape
    pp_sum = x.copy()
    for l, (kh, kw) in enumerate(_k_sizes(H, W, levels)):
        pooled = _avg_pool2d_np(x, kh, kw)
        y = np.einsum('oc,bcpq->bopq', np.asarray(conv_w[l], np.float64), pooled)
        sc = np.asarray(gamma[l], np.float64) / np.sqrt(np.asarray(var[l], np.float64) + eps)
        bs = np.asarray(beta[l], np.float64) - np.asarray(mean[l], np.float64) * sc
        y = y * sc[None, :, None, None] + bs[None, :, None, None]
        y = np.where(y > 0, y, 0.1 * y)                      # LeakyReLU(0.1) in ConvNormRelu
        up = _bilinear_up_np(y, H, W)
        pp_sum = pp_sum + up / levels
    pp_sum = pp_sum / 2.0
    return np.where(pp_sum > 0, pp_sum, 0.1 * pp_sum)


# ---------------------------------------------------------------- main

if __name__ == "__main__":
    B, C, H, W, levels = 2, 4, 16, 16, 4

    key = jax.random.PRNGKey(0)
    kx, kcw, kg, kb, km, kv = jax.random.split(key, 6)

    x = jax.random.normal(kx, (B, C, H, W), jnp.float32)
    # deterministic synthetic parameters (shapes implied by the module's __init__)
    conv_w = 0.3 * jax.random.normal(kcw, (levels, C, C), jnp.float32)      # 1x1 conv, no bias
    bn_gamma = 1.0 + 0.1 * jax.random.normal(kg, (levels, C), jnp.float32)
    bn_beta = 0.1 * jax.random.normal(kb, (levels, C), jnp.float32)
    bn_mean = 0.1 * jax.random.normal(km, (levels, C), jnp.float32)
    bn_var = 0.5 + jax.random.uniform(kv, (levels, C), jnp.float32)         # > 0

    out = pyramid_pooling_forward(x, conv_w, bn_gamma, bn_beta, bn_mean, bn_var,
                                  levels=levels)
    out = jax.block_until_ready(out)

    ref = _reference_numpy(np.asarray(x), np.asarray(conv_w), np.asarray(bn_gamma),
                           np.asarray(bn_beta), np.asarray(bn_mean), np.asarray(bn_var),
                           levels=levels)

    assert out.shape == (B, C, H, W)
    # tolerance covers the bf16 input / pool-operator path (f32 accumulation everywhere)
    np.testing.assert_allclose(np.asarray(out), ref, rtol=5e-3, atol=5e-3)
    print("KERNEL_OK")
</pallas_src>

<mosaic_0001>
module attributes {stable_mosaic.version = 11 : i64} {
  func.func @kernel(%arg0: memref<8x256xf32, #tpu.memory_space<vmem>>, %arg1: memref<256x256xbf16, #tpu.memory_space<vmem>>, %arg2: memref<4x8x8xf32, #tpu.memory_space<vmem>>, %arg3: memref<4x8x1xf32, #tpu.memory_space<vmem>>, %arg4: memref<4x64x256xf32, #tpu.memory_space<vmem>>, %arg5: memref<8x256xf32, #tpu.memory_space<vmem>>) attributes {dimension_semantics = [], scalar_prefetch = 0 : i64, scratch_operands = 0 : i64, tpu.core_type = #tpu.core_type<tc>} {
    %c0 = arith.constant 0 : index
    %c0_0 = arith.constant 0 : index
    %0 = vector.load %arg0[%c0, %c0_0] : memref<8x256xf32, #tpu.memory_space<vmem>>, vector<8x256xf32>
    %1 = arith.truncf %0 : vector<8x256xf32> to vector<8x256xbf16>
    %c0_1 = arith.constant 0 : index
    %c0_2 = arith.constant 0 : index
    %2 = vector.load %arg1[%c0_1, %c0_2] : memref<256x256xbf16, #tpu.memory_space<vmem>>, vector<256x256xbf16>
    %cst = arith.constant dense<0.000000e+00> : vector<8x256xf32>
    %3 = tpu.matmul %1, %2, %cst {dimension_numbers = #tpu.dot_dimension_numbers<[1], [0], [0], [1], [0, 0, 1, 1], [], []>} : vector<8x256xbf16>, vector<256x256xbf16>, vector<8x256xf32> -> vector<8x256xf32>
    %cst_3 = arith.constant 5.000000e-01 : f32
    %4 = vector.broadcast %cst_3 : f32 to vector<8x256xf32>
    %5 = arith.mulf %4, %0 : vector<8x256xf32>
    %6 = vector.extract_strided_slice %3 {offsets = [0, 0], sizes = [8, 64], strides = [1, 1]} : vector<8x256xf32> to vector<8x64xf32>
    %c0_4 = arith.constant 0 : index
    %c0_5 = arith.constant 0 : index
    %c0_6 = arith.constant 0 : index
    %7 = vector.load %arg2[%c0_4, %c0_5, %c0_6] : memref<4x8x8xf32, #tpu.memory_space<vmem>>, vector<1x8x8xf32>
    %8 = vector.shape_cast %7 : vector<1x8x8xf32> to vector<8x8xf32>
    %cst_7 = arith.constant dense<0.000000e+00> : vector<8x64xf32>
    %9 = tpu.matmul %8, %6, %cst_7 {dimension_numbers = #tpu.dot_dimension_numbers<[1], [0], [0], [1], [0, 0, 1, 1], [], []>} : vector<8x8xf32>, vector<8x64xf32>, vector<8x64xf32> -> vector<8x64xf32>
    %c0_8 = arith.constant 0 : index
    %c0_9 = arith.constant 0 : index
    %c0_10 = arith.constant 0 : index
    %10 = vector.load %arg3[%c0_8, %c0_9, %c0_10] : memref<4x8x1xf32, #tpu.memory_space<vmem>>, vector<1x8x1xf32>
    %11 = vector.shape_cast %10 : vector<1x8x1xf32> to vector<8x1xf32>
    %12 = vector.broadcast %11 : vector<8x1xf32> to vector<8x64xf32>
    %13 = arith.addf %9, %12 : vector<8x64xf32>
    %cst_11 = arith.constant 0.000000e+00 : f32
    %14 = vector.broadcast %cst_11 : f32 to vector<8x64xf32>
    %15 = arith.cmpf ogt, %13, %14 : vector<8x64xf32>
    %cst_12 = arith.constant 1.000000e-01 : f32
    %16 = vector.broadcast %cst_12 : f32 to vector<8x64xf32>
    %17 = arith.mulf %16, %13 : vector<8x64xf32>
    %18 = arith.select %15, %13, %17 : vector<8x64xi1>, vector<8x64xf32>
    %c0_13 = arith.constant 0 : index
    %c0_14 = arith.constant 0 : index
    %c0_15 = arith.constant 0 : index
    %19 = vector.load %arg4[%c0_13, %c0_14, %c0_15] : memref<4x64x256xf32, #tpu.memory_space<vmem>>, vector<1x64x256xf32>
    %20 = vector.shape_cast %19 : vector<1x64x256xf32> to vector<64x256xf32>
    %cst_16 = arith.constant dense<0.000000e+00> : vector<8x256xf32>
    %21 = tpu.matmul %18, %20, %cst_16 {dimension_numbers = #tpu.dot_dimension_numbers<[1], [0], [0], [1], [0, 0, 1, 1], [], []>} : vector<8x64xf32>, vector<64x256xf32>, vector<8x256xf32> -> vector<8x256xf32>
    %22 = arith.addf %5, %21 : vector<8x256xf32>
    %23 = vector.extract_strided_slice %3 {offsets = [0, 64], sizes = [8, 64], strides = [1, 1]} : vector<8x256xf32> to vector<8x64xf32>
    %c1 = arith.constant 1 : index
    %c0_17 = arith.constant 0 : index
    %c0_18 = arith.constant 0 : index
    %24 = vector.load %arg2[%c1, %c0_17, %c0_18] : memref<4x8x8xf32, #tpu.memory_space<vmem>>, vector<1x8x8xf32>
    %25 = vector.shape_cast %24 : vector<1x8x8xf32> to vector<8x8xf32>
    %cst_19 = arith.constant dense<0.000000e+00> : vector<8x64xf32>
    %26 = tpu.matmul %25, %23, %cst_19 {dimension_numbers = #tpu.dot_dimension_numbers<[1], [0], [0], [1], [0, 0, 1, 1], [], []>} : vector<8x8xf32>, vector<8x64xf32>, vector<8x64xf32> -> vector<8x64xf32>
    %c1_20 = arith.constant 1 : index
    %c0_21 = arith.constant 0 : index
    %c0_22 = arith.constant 0 : index
    %27 = vector.load %arg3[%c1_20, %c0_21, %c0_22] : memref<4x8x1xf32, #tpu.memory_space<vmem>>, vector<1x8x1xf32>
    %28 = vector.shape_cast %27 : vector<1x8x1xf32> to vector<8x1xf32>
    %29 = vector.broadcast %28 : vector<8x1xf32> to vector<8x64xf32>
    %30 = arith.addf %26, %29 : vector<8x64xf32>
    %cst_23 = arith.constant 0.000000e+00 : f32
    %31 = vector.broadcast %cst_23 : f32 to vector<8x64xf32>
    %32 = arith.cmpf ogt, %30, %31 : vector<8x64xf32>
    %cst_24 = arith.constant 1.000000e-01 : f32
    %33 = vector.broadcast %cst_24 : f32 to vector<8x64xf32>
    %34 = arith.mulf %33, %30 : vector<8x64xf32>
    %35 = arith.select %32, %30, %34 : vector<8x64xi1>, vector<8x64xf32>
    %c1_25 = arith.constant 1 : index
    %c0_26 = arith.constant 0 : index
    %c0_27 = arith.constant 0 : index
    %36 = vector.load %arg4[%c1_25, %c0_26, %c0_27] : memref<4x64x256xf32, #tpu.memory_space<vmem>>, vector<1x64x256xf32>
    %37 = vector.shape_cast %36 : vector<1x64x256xf32> to vector<64x256xf32>
    %cst_28 = arith.constant dense<0.000000e+00> : vector<8x256xf32>
    %38 = tpu.matmul %35, %37, %cst_28 {dimension_numbers = #tpu.dot_dimension_numbers<[1], [0], [0], [1], [0, 0, 1, 1], [], []>} : vector<8x64xf32>, vector<64x256xf32>, vector<8x256xf32> -> vector<8x256xf32>
    %39 = arith.addf %22, %38 : vector<8x256xf32>
    %40 = vector.extract_strided_slice %3 {offsets = [0, 128], sizes = [8, 64], strides = [1, 1]} : vector<8x256xf32> to vector<8x64xf32>
    %c2 = arith.constant 2 : index
    %c0_29 = arith.constant 0 : index
    %c0_30 = arith.constant 0 : index
    %41 = vector.load %arg2[%c2, %c0_29, %c0_30] : memref<4x8x8xf32, #tpu.memory_space<vmem>>, vector<1x8x8xf32>
    %42 = vector.shape_cast %41 : vector<1x8x8xf32> to vector<8x8xf32>
    %cst_31 = arith.constant dense<0.000000e+00> : vector<8x64xf32>
    %43 = tpu.matmul %42, %40, %cst_31 {dimension_numbers = #tpu.dot_dimension_numbers<[1], [0], [0], [1], [0, 0, 1, 1], [], []>} : vector<8x8xf32>, vector<8x64xf32>, vector<8x64xf32> -> vector<8x64xf32>
    %c2_32 = arith.constant 2 : index
    %c0_33 = arith.constant 0 : index
    %c0_34 = arith.constant 0 : index
    %44 = vector.load %arg3[%c2_32, %c0_33, %c0_34] : memref<4x8x1xf32, #tpu.memory_space<vmem>>, vector<1x8x1xf32>
    %45 = vector.shape_cast %44 : vector<1x8x1xf32> to vector<8x1xf32>
    %46 = vector.broadcast %45 : vector<8x1xf32> to vector<8x64xf32>
    %47 = arith.addf %43, %46 : vector<8x64xf32>
    %cst_35 = arith.constant 0.000000e+00 : f32
    %48 = vector.broadcast %cst_35 : f32 to vector<8x64xf32>
    %49 = arith.cmpf ogt, %47, %48 : vector<8x64xf32>
    %cst_36 = arith.constant 1.000000e-01 : f32
    %50 = vector.broadcast %cst_36 : f32 to vector<8x64xf32>
    %51 = arith.mulf %50, %47 : vector<8x64xf32>
    %52 = arith.select %49, %47, %51 : vector<8x64xi1>, vector<8x64xf32>
    %c2_37 = arith.constant 2 : index
    %c0_38 = arith.constant 0 : index
    %c0_39 = arith.constant 0 : index
    %53 = vector.load %arg4[%c2_37, %c0_38, %c0_39] : memref<4x64x256xf32, #tpu.memory_space<vmem>>, vector<1x64x256xf32>
    %54 = vector.shape_cast %53 : vector<1x64x256xf32> to vector<64x256xf32>
    %cst_40 = arith.constant dense<0.000000e+00> : vector<8x256xf32>
    %55 = tpu.matmul %52, %54, %cst_40 {dimension_numbers = #tpu.dot_dimension_numbers<[1], [0], [0], [1], [0, 0, 1, 1], [], []>} : vector<8x64xf32>, vector<64x256xf32>, vector<8x256xf32> -> vector<8x256xf32>
    %56 = arith.addf %39, %55 : vector<8x256xf32>
    %57 = vector.extract_strided_slice %3 {offsets = [0, 192], sizes = [8, 64], strides = [1, 1]} : vector<8x256xf32> to vector<8x64xf32>
    %c3 = arith.constant 3 : index
    %c0_41 = arith.constant 0 : index
    %c0_42 = arith.constant 0 : index
    %58 = vector.load %arg2[%c3, %c0_41, %c0_42] : memref<4x8x8xf32, #tpu.memory_space<vmem>>, vector<1x8x8xf32>
    %59 = vector.shape_cast %58 : vector<1x8x8xf32> to vector<8x8xf32>
    %cst_43 = arith.constant dense<0.000000e+00> : vector<8x64xf32>
    %60 = tpu.matmul %59, %57, %cst_43 {dimension_numbers = #tpu.dot_dimension_numbers<[1], [0], [0], [1], [0, 0, 1, 1], [], []>} : vector<8x8xf32>, vector<8x64xf32>, vector<8x64xf32> -> vector<8x64xf32>
    %c3_44 = arith.constant 3 : index
    %c0_45 = arith.constant 0 : index
    %c0_46 = arith.constant 0 : index
    %61 = vector.load %arg3[%c3_44, %c0_45, %c0_46] : memref<4x8x1xf32, #tpu.memory_space<vmem>>, vector<1x8x1xf32>
    %62 = vector.shape_cast %61 : vector<1x8x1xf32> to vector<8x1xf32>
    %63 = vector.broadcast %62 : vector<8x1xf32> to vector<8x64xf32>
    %64 = arith.addf %60, %63 : vector<8x64xf32>
    %cst_47 = arith.constant 0.000000e+00 : f32
    %65 = vector.broadcast %cst_47 : f32 to vector<8x64xf32>
    %66 = arith.cmpf ogt, %64, %65 : vector<8x64xf32>
    %cst_48 = arith.constant 1.000000e-01 : f32
    %67 = vector.broadcast %cst_48 : f32 to vector<8x64xf32>
    %68 = arith.mulf %67, %64 : vector<8x64xf32>
    %69 = arith.select %66, %64, %68 : vector<8x64xi1>, vector<8x64xf32>
    %c3_49 = arith.constant 3 : index
    %c0_50 = arith.constant 0 : index
    %c0_51 = arith.constant 0 : index
    %70 = vector.load %arg4[%c3_49, %c0_50, %c0_51] : memref<4x64x256xf32, #tpu.memory_space<vmem>>, vector<1x64x256xf32>
    %71 = vector.shape_cast %70 : vector<1x64x256xf32> to vector<64x256xf32>
    %cst_52 = arith.constant dense<0.000000e+00> : vector<8x256xf32>
    %72 = tpu.matmul %69, %71, %cst_52 {dimension_numbers = #tpu.dot_dimension_numbers<[1], [0], [0], [1], [0, 0, 1, 1], [], []>} : vector<8x64xf32>, vector<64x256xf32>, vector<8x256xf32> -> vector<8x256xf32>
    %73 = arith.addf %56, %72 : vector<8x256xf32>
    %cst_53 = arith.constant 0.000000e+00 : f32
    %74 = vector.broadcast %cst_53 : f32 to vector<8x256xf32>
    %75 = arith.cmpf ogt, %73, %74 : vector<8x256xf32>
    %cst_54 = arith.constant 1.000000e-01 : f32
    %76 = vector.broadcast %cst_54 : f32 to vector<8x256xf32>
    %77 = arith.mulf %76, %73 : vector<8x256xf32>
    %78 = arith.select %75, %73, %77 : vector<8x256xi1>, vector<8x256xf32>
    %c0_55 = arith.constant 0 : index
    %c0_56 = arith.constant 0 : index
    %79 = vector.load %arg5[%c0_55, %c0_56] : memref<8x256xf32, #tpu.memory_space<vmem>>, vector<8x256xf32>
    tpu.vector_store %arg5[%c0_55, %c0_56], %78 {strides = array<i32>} : memref<8x256xf32, #tpu.memory_space<vmem>>, vector<8x256xf32>,
    return
  }
}

</mosaic_0001>

<bundles_post_ra>
// kernel: tpu_custom_call.1
= control target key start
LH: loop header
LB: loop body
LE: loop exit
PB: predicated region body
PF: predicated region fallthrough
CT: control target
= control target key end

     0   :  { %10 = vsyncpa [#allocation3], 0  ;;  %s1496_s0 = inlined_call_operand.hbm [shape: f32[8,256], index: 0, kind: input, shape index: {}]   ;;  %s1497_s1 = inlined_call_operand.hbm [shape: bf16[256,256], index: 1, kind: input, shape index: {}]   ;;  %s1498_s2 = inlined_call_operand.vmem [shape: f32[4,8,8], index: 2, kind: input, shape index: {}]   ;;  %s1499_s3 = inlined_call_operand.vmem [shape: f32[4,8,1], index: 3, kind: input, shape index: {}]   ;;  %s1500_s4 = inlined_call_operand.hbm [shape: f32[4,64,256], index: 4, kind: input, shape index: {}]   ;;  %s1501_s5 = inlined_call_operand.hbm [shape: f32[8,256], index: 5, kind: output, shape index: {}]  }
   0x1   :  { %11 = vsyncpa [#allocation6], 0 }
   0x2   :  { %12 = vsyncpa [#allocation4], 0  ;;  %s1344_s18 = smov [#allocation5]   ;;  %s1250_s22 = scalar_lea.hbm %s1497_s1, 4096 }
   0x3   :  { %s28_s19 = sshll.u32 %s1344_s18, 4  ;;  %p1251_p0 = scmp.ne.s32.totalorder %s1497_s1, %s1250_s22  ;;  %s29_s19 = int_to_ptr.vmem [resolvable:$true] %s28_s19 }
   0x4   :  { %p1254_p1 = scmp.lt.u32.totalorder %s1250_s22, %s1497_s1 }
   0x6   :  { %p1256_p2 = pnand %p1254_p1, %p1251_p0 }
   0x8   :  { %1259 = shalt.err (!%p1256_p2)
}
   0x9   :  { %s1260_s27 = scalar_lea.vmem %s29_s19, 4096  ;;  %p1265_p4 = scmp.lt.s32.totalorder %s29_s19, %s29_s19 }
   0xa   :  { %p1261_p3 = scmp.ne.s32.totalorder %s29_s19, %s1260_s27  ;;  %p1266_p5 = scmp.lt.s32.totalorder %s1260_s27, %s1260_s27 }
   0xc   :  { %p1267_p6 = por %p1266_p5, %p1265_p4 }
   0xe   :  { %p1268_p7 = pnand %p1267_p6, %p1261_p3 }
  0x10   :  { %1271 = shalt.err (!%p1268_p7)
}
  0x11   :  { %s1345_s28 = smov 128   ;;  %s1346_s29 = smov 8  }
  0x12   :  { %34 = dma.hbm_to_vmem [thread:$0]  %s1497_s1, 4096, %s29_s19, [#allocation6], %s1345_s28, %s1345_s28, %s1346_s29  }
  0x13   :  { %s1347_s7 = smov [#allocation2]   ;;  %s1348_s9 = smov [#allocation7]  }
  0x14   :  { %s19_s8 = sshll.u32 %s1347_s7, 4  ;;  %s44_s10 = sshll.u32 %s1348_s9, 4  ;;  %s20_s8 = int_to_ptr.vmem [resolvable:$true] %s19_s8  ;;  %s45_s10 = int_to_ptr.vmem [resolvable:$true] %s44_s10 }
  0x15   :  { %s1272_s13 = scalar_lea.hbm %s1496_s0, 256 }
  0x16   :  { %p1273_p8 = scmp.ne.s32.totalorder %s1496_s0, %s1272_s13  ;;  %p1276_p9 = scmp.lt.u32.totalorder %s1272_s13, %s1496_s0 }
  0x18   :  { %p1278_p10 = pnand %p1276_p9, %p1273_p8 }
  0x1a   :  { %1281 = shalt.err (!%p1278_p10)
}
  0x1b   :  { %s1282_s1 = scalar_lea.vmem %s20_s8, 256  ;;  %p1287_p12 = scmp.lt.s32.totalorder %s20_s8, %s20_s8 }
  0x1c   :  { %p1283_p11 = scmp.ne.s32.totalorder %s20_s8, %s1282_s1  ;;  %p1288_p13 = scmp.lt.s32.totalorder %s1282_s1, %s1282_s1 }
  0x1e   :  { %p1289_p0 = por %p1288_p13, %p1287_p12 }
  0x20   :  { %p1290_p1 = pnand %p1289_p0, %p1283_p11 }
  0x22   :  { %1293 = shalt.err (!%p1290_p1)
}
  0x23   :  { %22 = dma.hbm_to_vmem [thread:$0]  %s1496_s0, 256, %s20_s8, [#allocation3]  }
  0x24   :  { %s1294_s22 = scalar_lea.hbm %s1500_s4, 8192 }
  0x25   :  { %p1295_p2 = scmp.ne.s32.totalorder %s1500_s4, %s1294_s22  ;;  %p1298_p3 = scmp.lt.u32.totalorder %s1294_s22, %s1500_s4 }
  0x27   :  { %p1300_p4 = pnand %p1298_p3, %p1295_p2 }
  0x29   :  { %1303 = shalt.err (!%p1300_p4)
}
  0x2a   :  { %s1304_s27 = scalar_lea.vmem %s45_s10, 8192  ;;  %p1309_p6 = scmp.lt.s32.totalorder %s45_s10, %s45_s10 }
  0x2b   :  { %p1305_p5 = scmp.ne.s32.totalorder %s45_s10, %s1304_s27  ;;  %p1310_p7 = scmp.lt.s32.totalorder %s1304_s27, %s1304_s27 }
  0x2d   :  { %p1311_p8 = por %p1310_p7, %p1309_p6 }
  0x2f   :  { %p1312_p9 = pnand %p1311_p8, %p1305_p5 }
  0x31   :  { %1315 = shalt.err (!%p1312_p9)
}
  0x32   :  { %s1349_s0 = smov 256   ;;  %s1350_s28 = smov 16  }
  0x33   :  { %50 = dma.hbm_to_vmem [thread:$0]  %s1500_s4, 8192, %s45_s10, [#allocation6], %s1349_s0, %s1349_s0, %s1350_s28  }
  0x34   :  { %1338 = dma.done.wait [#allocation3], 256  }
  0x35   :  { %1339 = vsyncadd [#allocation3], 4294967040 }
  0x36   :  { %1340 = dma.done.wait [#allocation6], 12288  }
  0x37   :  { %1341 = vsyncadd [#allocation6], 4294955008  ;;  %v1351_v0 = vmov 0   ;;  %v1202_v1 = vld [vmem:[#allocation5 + $0x4] ss:$8 sps:$4 sm:$0xff]   ;;  %v1422_v14 = vld [vmem:[#allocation2 + $0x8] sm:$0xff] }
  0x38   :  { %1201 = vset.pattern.permute.xlu1 %v1351_v0  ;;  %1200 = vset.pattern.permute.xlu0 %v1351_v0  ;;  %v1204_v2 = vld [vmem:[#allocation5] ss:$8 sps:$4 sm:$0xff]   ;;  %v1205_v3 = vld [vmem:[#allocation5 + $0x14] ss:$8 sps:$4 sm:$0xff]   ;;  %v1207_v4 = vld [vmem:[#allocation5 + $0x10] ss:$8 sps:$4 sm:$0xff]   ;;  %v63_v15 = vpack.c.bf16 %v1422_v14, %v1422_v14 }
  0x39   :  { %256 = vmatprep.subr.bf16.mxu0 %v1202_v1  ;;  %v1208_v5 = vld [vmem:[#allocation5 + $0x24] ss:$8 sps:$4 sm:$0xff]   ;;  %v1210_v6 = vld [vmem:[#allocation5 + $0x20] ss:$8 sps:$4 sm:$0xff]   ;;  %v1211_v7 = vld [vmem:[#allocation5 + $0x34] ss:$8 sps:$4 sm:$0xff]  }
  0x3a   :  { %257 = vmatpush1.bf16.msra.mxu0 %v1204_v2  ;;  %v1213_v8 = vld [vmem:[#allocation5 + $0x30] ss:$8 sps:$4 sm:$0xff]   ;;  %v1214_v9 = vld [vmem:[#allocation5 + $0x44] ss:$8 sps:$4 sm:$0xff]   ;;  %v1216_v10 = vld [vmem:[#allocation5 + $0x40] ss:$8 sps:$4 sm:$0xff]   ;;  %288 = vmatprep.mubr.bf16.mxu0 %v63_v15 }
  0x3b   :  { %258 = vmatprep.subr.bf16.mxu0 %v1205_v3  ;;  %v1217_v11 = vld [vmem:[#allocation5 + $0x54] ss:$8 sps:$4 sm:$0xff]   ;;  %v1219_v12 = vld [vmem:[#allocation5 + $0x50] ss:$8 sps:$4 sm:$0xff]   ;;  %v1220_v13 = vld [vmem:[#allocation5 + $0x64] ss:$8 sps:$4 sm:$0xff]  }
  0x3c   :  { %v1077_v16 = vld [vmem:[%s1499_s3 + $0x8] sm:$0xff]  ;;  %v1222_v17 = vld [vmem:[#allocation5 + $0x60] ss:$8 sps:$4 sm:$0xff]   ;;  %v1226_v21 = vld [vmem:[#allocation5 + $0x84] ss:$8 sps:$4 sm:$0xff]   ;;  %v1352_v39 = vmov 0.0  }
  0x3d   :  { %482 = vperm.xlu1 %1201, %v1077_v16   ;;  %v1223_v18 = vld [vmem:[#allocation5 + $0x74] ss:$8 sps:$4 sm:$0xff]   ;;  %v1081_v19 = vld [vmem:[%s1499_s3 + $0x10] sm:$0xff]  ;;  %v1225_v20 = vld [vmem:[#allocation5 + $0x70] ss:$8 sps:$4 sm:$0xff]   ;;  %1096 = vmatprep.subr.mxu1 %v1352_v39  ;;  %vm1353_vm0 = vmmov 0  }
  0x3e   :  { %259 = vmatpush1.bf16.msra.mxu0 %v1207_v4  ;;  %v1228_v22 = vld [vmem:[#allocation5 + $0x80] ss:$8 sps:$4 sm:$0xff]   ;;  %v1229_v23 = vld [vmem:[#allocation5 + $0x94] ss:$8 sps:$4 sm:$0xff]   ;;  %v1231_v24 = vld [vmem:[#allocation5 + $0x90] ss:$8 sps:$4 sm:$0xff]   ;;  %1098 = vmatprep.mubr.msk.f32.mxu1 %vm1353_vm0, %v1352_v39 }
  0x3f   :  { %260 = vmatprep.subr.bf16.mxu0 %v1208_v5  ;;  %v1232_v25 = vld [vmem:[#allocation5 + $0xa4] ss:$8 sps:$4 sm:$0xff]   ;;  %v1234_v26 = vld [vmem:[#allocation5 + $0xa0] ss:$8 sps:$4 sm:$0xff]   ;;  %v1235_v27 = vld [vmem:[#allocation5 + $0xb4] ss:$8 sps:$4 sm:$0xff]  }
  0x40   :  { %v1237_v28 = vld [vmem:[#allocation5 + $0xb0] ss:$8 sps:$4 sm:$0xff]   ;;  %v1238_v29 = vld [vmem:[#allocation5 + $0xc4] ss:$8 sps:$4 sm:$0xff]   ;;  %v1240_v30 = vld [vmem:[#allocation5 + $0xc0] ss:$8 sps:$4 sm:$0xff]  }
  0x41   :  { %664 = vperm.xlu1 %1201, %v1081_v19   ;;  %v1241_v31 = vld [vmem:[#allocation5 + $0xd4] ss:$8 sps:$4 sm:$0xff]   ;;  %v1243_v32 = vld [vmem:[#allocation5 + $0xd0] ss:$8 sps:$4 sm:$0xff]   ;;  %v1244_v33 = vld [vmem:[#allocation5 + $0xe4] ss:$8 sps:$4 sm:$0xff]  }
  0x42   :  { %261 = vmatpush1.bf16.msra.mxu0 %v1210_v6  ;;  %v1246_v34 = vld [vmem:[#allocation5 + $0xe0] ss:$8 sps:$4 sm:$0xff]   ;;  %v1247_v35 = vld [vmem:[#allocation5 + $0xf4] ss:$8 sps:$4 sm:$0xff]   ;;  %v1249_v36 = vld [vmem:[#allocation5 + $0xf0] ss:$8 sps:$4 sm:$0xff]  }
  0x43   :  { %262 = vmatprep.subr.bf16.mxu0 %v1211_v7  ;;  %v1432_v37 = vld [vmem:[#allocation2] sm:$0xff]  ;;  %v384_v40 = vld [vmem:[#allocation7 + $0x8] sm:$0xff]  ;;  %v386_v41 = vld [vmem:[#allocation7 + $0x18] sm:$0xff]  ;;  %vm306_vm1 = vcmask 64512   ;;  %s1354_s11 = smov 64   ;;  %vm399_vm3 = vcmask 523264  }
  0x44   :  { %v62_v38 = vpack.c.bf16 %v1432_v37, %v1432_v37  ;;  %v383_v42 = vld [vmem:[#allocation7] sm:$0xff]  ;;  %v385_v43 = vld [vmem:[#allocation7 + $0x10] sm:$0xff]  ;;  %v388_v44 = vld [vmem:[#allocation7 + $0x28] sm:$0xff]  ;;  %v1116_v47 = vpack.c.bf16 %v386_v41, %v384_v40 }
  0x45   :  { %v390_v45 = vld [vmem:[#allocation7 + $0x38] sm:$0xff]  ;;  %v299_v46 = vld [vmem:[%s1498_s2] sm:$0xff]  ;;  %v1118_v49 = vpack.c.bf16 %v385_v43, %v383_v42  ;;  %v387_v52 = vld [vmem:[#allocation7 + $0x20] sm:$0xff] }
  0x46   :  { %263 = vmatpush1.bf16.msra.mxu0 %v1213_v8  ;;  %v1120_v51 = vpack.c.bf16 %v390_v45, %v388_v44  ;;  %v389_v53 = vld [vmem:[#allocation7 + $0x30] sm:$0xff]  ;;  %v392_v56 = vld [vmem:[#allocation7 + $0x48] sm:$0xff]  ;;  %v394_v57 = vld [vmem:[#allocation7 + $0x58] sm:$0xff] }
  0x47   :  { %264 = vmatprep.subr.bf16.mxu0 %v1214_v9  ;;  %v300_v55 = vld [vmem:[%s1499_s3] sm:$0xff]  ;;  %v1122_v59 = vpack.c.bf16 %v389_v53, %v387_v52  ;;  %v1124_v60 = vpack.c.bf16 %v394_v57, %v392_v56  ;;  %v391_v61 = vld [vmem:[#allocation7 + $0x40] sm:$0xff]  ;;  %v1085_v63 = vld [vmem:[%s1499_s3 + $0x18] sm:$0xff] }
  0x48   :  { %v393_v62 = vld [vmem:[#allocation7 + $0x50] sm:$0xff]  ;;  %v396_v1 = vld [vmem:[#allocation7 + $0x68] sm:$0xff]  ;;  %v398_v2 = vld [vmem:[#allocation7 + $0x78] sm:$0xff] }
  0x49   :  { %v1126_v0 = vpack.c.bf16 %v393_v62, %v391_v61  ;;  %v395_v3 = vld [vmem:[#allocation7 + $0x60] sm:$0xff]  ;;  %v1128_v4 = vpack.c.bf16 %v398_v2, %v396_v1  ;;  %v397_v5 = vld [vmem:[#allocation7 + $0x70] sm:$0xff]  ;;  %v567_v6 = vld [vmem:[#allocation7 + $0x88] sm:$0xff] }
  0x4a   :  { %265 = vmatpush1.bf16.msra.mxu0 %v1216_v10  ;;  %v569_v7 = vld [vmem:[#allocation7 + $0x98] sm:$0xff]  ;;  %v1130_v8 = vpack.c.bf16 %v397_v5, %v395_v3  ;;  %v566_v15 = vld [vmem:[#allocation7 + $0x80] sm:$0xff]  ;;  %v568_v16 = vld [vmem:[#allocation7 + $0x90] sm:$0xff] }
  0x4b   :  { %266 = vmatprep.subr.bf16.mxu0 %v1217_v11  ;;  %v1132_v9 = vpack.c.bf16 %v569_v7, %v567_v6  ;;  %v1076_v10 = vld [vmem:[%s1498_s2 + $0x8] sm:$0xff]  ;;  %v571_v19 = vld [vmem:[#allocation7 + $0xa8] sm:$0xff]  ;;  %v580_v40 = vld [vmem:[#allocation7 + $0xf0] sm:$0xff] }
  0x4c   :  { %v746_v52 = vld [vmem:[#allocation7 + $0x110] sm:$0xff]  ;;  %v1080_v56 = vld [vmem:[%s1498_s2 + $0x10] sm:$0xff]  ;;  %v753_v61 = vld [vmem:[#allocation7 + $0x148] sm:$0xff] }
  0x4d   :  { %v755_v62 = vld [vmem:[#allocation7 + $0x158] sm:$0xff]  ;;  %v754_v1 = vld [vmem:[#allocation7 + $0x150] sm:$0xff]  ;;  %v757_v3 = vld [vmem:[#allocation7 + $0x168] sm:$0xff] }
  0x4e   :  { %267 = vmatpush1.bf16.msra.mxu0 %v1219_v12  ;;  %v756_v6 = vld [vmem:[#allocation7 + $0x160] sm:$0xff]  ;;  %v758_v7 = vld [vmem:[#allocation7 + $0x170] sm:$0xff] }
  0x4f   :  { %268 = vmatprep.subr.bf16.mxu0 %v1220_v13 }
  0x52   :  { %269 = vmatpush1.bf16.msra.mxu0 %v1222_v17 }
  0x53   :  { %270 = vmatprep.subr.bf16.mxu0 %v1223_v18 }
  0x56   :  { %271 = vmatpush1.bf16.msra.mxu0 %v1225_v20  ;;  %v573_v20 = vld [vmem:[#allocation7 + $0xb8] sm:$0xff] }
  0x57   :  { %272 = vmatprep.subr.bf16.mxu0 %v1226_v21 }
  0x5a   :  { %273 = vmatpush1.bf16.msra.mxu0 %v1228_v22  ;;  %v1134_v22 = vpack.c.bf16 %v568_v16, %v566_v15  ;;  %v929_v15 = vld [vmem:[#allocation7 + $0x198] sm:$0xff] }
  0x5b   :  { %274 = vmatprep.subr.bf16.mxu0 %v1229_v23  ;;  %v1136_v23 = vpack.c.bf16 %v573_v20, %v571_v19  ;;  %v928_v19 = vld [vmem:[#allocation7 + $0x190] sm:$0xff] }
  0x5e   :  { %275 = vmatpush1.bf16.msra.mxu0 %v1231_v24  ;;  %v570_v24 = vld [vmem:[#allocation7 + $0xa0] sm:$0xff] }
  0x5f   :  { %276 = vmatprep.subr.bf16.mxu0 %v1232_v25  ;;  %v572_v25 = vld [vmem:[#allocation7 + $0xb0] sm:$0xff] }
  0x62   :  { %277 = vmatpush1.bf16.msra.mxu0 %v1234_v26 }
  0x63   :  { %278 = vmatprep.subr.bf16.mxu0 %v1235_v27  ;;  %v575_v27 = vld [vmem:[#allocation7 + $0xc8] sm:$0xff] }
  0x66   :  { %279 = vmatpush1.bf16.msra.mxu0 %v1237_v28  ;;  %v577_v28 = vld [vmem:[#allocation7 + $0xd8] sm:$0xff] }
  0x67   :  { %280 = vmatprep.subr.bf16.mxu0 %v1238_v29  ;;  %v1138_v29 = vpack.c.bf16 %v572_v25, %v570_v24  ;;  %v1084_v24 = vld [vmem:[%s1498_s2 + $0x18] sm:$0xff]  ;;  %s1355_s2 = smov [#allocation8]  }
  0x68   :  { %s1032_s20 = sshll.u32 %s1355_s2, 4  ;;  %s1033_s20 = int_to_ptr.vmem [resolvable:$true] %s1032_s20 }
  0x69   :  { %s1316_s21 = scalar_lea.vmem %s1033_s20, 256  ;;  %p1321_p11 = scmp.lt.s32.totalorder %s1033_s20, %s1033_s20 }
  0x6a   :  { %281 = vmatpush1.bf16.msra.mxu0 %v1240_v30  ;;  %v1140_v30 = vpack.c.bf16 %v577_v28, %v575_v27  ;;  %v930_v27 = vld [vmem:[#allocation7 + $0x1a0] sm:$0xff]  ;;  %v932_v28 = vld [vmem:[#allocation7 + $0x1b0] sm:$0xff]  ;;  %p1317_p10 = scmp.ne.s32.totalorder %s1033_s20, %s1316_s21  ;;  %p1322_p12 = scmp.lt.s32.totalorder %s1316_s21, %s1316_s21 }
  0x6b   :  { %282 = vmatprep.subr.bf16.mxu0 %v1241_v31  ;;  %v574_v31 = vld [vmem:[#allocation7 + $0xc0] sm:$0xff] }
  0x6c   :  { %p1323_p13 = por %p1322_p12, %p1321_p11 }
  0x6e   :  { %283 = vmatpush1.bf16.msra.mxu0 %v1243_v32  ;;  %v576_v32 = vld [vmem:[#allocation7 + $0xd0] sm:$0xff]  ;;  %p1324_p0 = pnand %p1323_p13, %p1317_p10 }
  0x6f   :  { %284 = vmatprep.subr.bf16.mxu0 %v1244_v33  ;;  %v579_v33 = vld [vmem:[#allocation7 + $0xe8] sm:$0xff] }
  0x72   :  { %285 = vmatpush1.bf16.msra.mxu0 %v1246_v34  ;;  %v581_v34 = vld [vmem:[#allocation7 + $0xf8] sm:$0xff] }
  0x73   :  { %286 = vmatprep.subr.bf16.mxu0 %v1247_v35  ;;  %v1142_v35 = vpack.c.bf16 %v576_v32, %v574_v31  ;;  %v1170_v31 = vpack.c.bf16 %v932_v28, %v930_v27 }
  0x76   :  { %287 = vmatpush1.bf16.msra.mxu0 %v1249_v36  ;;  %v1144_v36 = vpack.c.bf16 %v581_v34, %v579_v33  ;;  %v934_v33 = vld [vmem:[#allocation7 + $0x1c0] sm:$0xff]  ;;  %v936_v34 = vld [vmem:[#allocation7 + $0x1d0] sm:$0xff] }
  0x77   :  { %1101 = vmatprep.subr.mxu0 %v1352_v39 }
  0x79   :  { %289 = vmatmul.mubr.bf16.vlgmr.msra.gmra.mrb[0].mxu0 %v62_v38  ;;  %v578_v38 = vld [vmem:[#allocation7 + $0xe0] sm:$0xff] }
  0x7a   :  { %1103 = vmatprep.mubr.msk.f32.mxu0 %vm1353_vm0, %v1352_v39  ;;  %v1146_v41 = vpack.c.bf16 %v580_v40, %v578_v38  ;;  %v941_v38 = vld [vmem:[#allocation7 + $0x1f8] sm:$0xff] }
  0xbc   :  { %v483_v42 = vpop.permute.xlu1 %482 }
 0x14c   :  { %v290_v48 = vpop.f32.mrb[0].mxu0 }
 0x14d   :  { %486 = vrot.lane.b32.xlu0 %v290_v48, %s1354_s11  ;;  %v1445_v50 = vpop.f32.mrb[1].mxu0  ;;  %1097 = vmatpush3.msra.mxu1 %v290_v48 }
 0x14e   :  { %846 = vrot.lane.b32.xlu1 %v1445_v50, %s1354_s11  ;;  %v294_v54 = vpop.f32.mrb[2].mxu0  ;;  %1099 = vmatmul.mubr.msk.f32.vlgmr.msra.gmra.mrb[0].mxu1 %vm306_vm1, %v299_v46  ;;  %v745_v46 = vld [vmem:[#allocation7 + $0x108] sm:$0xff] }
 0x14f   :  { %v295_v58 = vpop.f32.mrb[3].mxu0  ;;  %1117 = vmatprep.subr.bf16.mxu1 %v1116_v47  ;;  %467 = vmatprep.mubr.f32.mxu1 %v1352_v39  ;;  %v747_v47 = vld [vmem:[#allocation7 + $0x118] sm:$0xff]  ;;  %v749_v54 = vld [vmem:[#allocation7 + $0x128] sm:$0xff] }
 0x150   :  { %1119 = vmatpush1.bf16.msra.mxu1 %v1118_v49  ;;  %v1148_v49 = vpack.c.bf16 %v747_v47, %v745_v46 }
 0x151   :  { %303 = vperm.xlu0 %1200, %v300_v55   ;;  %1121 = vmatprep.subr.bf16.mxu1 %v1120_v51  ;;  %v744_v51 = vld [vmem:[#allocation7 + $0x100] sm:$0xff]  ;;  %v751_v55 = vld [vmem:[#allocation7 + $0x138] sm:$0xff] }
 0x152   :  { %v1150_v57 = vpack.c.bf16 %v746_v52, %v744_v51  ;;  %v1152_v58 = vpack.c.bf16 %v751_v55, %v749_v54  ;;  %v298_v51 = vmul.f32 0.5, %v1422_v14 }
 0x154   :  { %1123 = vmatpush1.bf16.msra.mxu1 %v1122_v59  ;;  %v748_v59 = vld [vmem:[#allocation7 + $0x120] sm:$0xff] }
 0x155   :  { %842 = vperm.xlu0 %1200, %v1085_v63   ;;  %1125 = vmatprep.subr.bf16.mxu1 %v1124_v60  ;;  %v750_v60 = vld [vmem:[#allocation7 + $0x130] sm:$0xff] }
 0x156   :  { %v1154_v63 = vpack.c.bf16 %v750_v60, %v748_v59 }
 0x158   :  { %1127 = vmatpush1.bf16.msra.mxu1 %v1126_v0  ;;  %v752_v0 = vld [vmem:[#allocation7 + $0x140] sm:$0xff] }
 0x159   :  { %1129 = vmatprep.subr.bf16.mxu1 %v1128_v4  ;;  %v1158_v2 = vpack.c.bf16 %v754_v1, %v752_v0  ;;  %v759_v4 = vld [vmem:[#allocation7 + $0x178] sm:$0xff] }
 0x15a   :  { %v1160_v5 = vpack.c.bf16 %v759_v4, %v757_v3 }
 0x15c   :  { %1131 = vmatpush1.bf16.msra.mxu1 %v1130_v8  ;;  %v1162_v8 = vpack.c.bf16 %v758_v7, %v756_v6 }
 0x15d   :  { %1133 = vmatprep.subr.bf16.mxu1 %v1132_v9  ;;  %v665_v9 = vpop.permute.xlu1 %664 }
 0x1bf   :  { %v487_v11 = vpop.permute.xlu0 %486 }
 0x1c0   :  { %1102 = vmatpush3.msra.mxu0 %v487_v11 }
 0x1c1   :  { %1104 = vmatmul.mubr.msk.f32.vlgmr.msra.gmra.mrb[4].mxu0 %vm306_vm1, %v1076_v10 }
 0x1d0   :  { %v304_v12 = vpop.permute.xlu0 %303 }
 0x221   :  { %v376_v13 = vpop.f32.mrb[0].mxu1 }
 0x222   :  { %v377_v17 = vadd.f32 %v376_v13, %v304_v12  ;;  %v1100_v18 = vpop.f32.mrb[1].mxu1  ;;  %v927_v13 = vld [vmem:[#allocation7 + $0x188] sm:$0xff] }
 0x223   :  { %v926_v18 = vld [vmem:[#allocation7 + $0x180] sm:$0xff] }
 0x224   :  { %vm380_vm2 = vcmp.gt.f32.partialorder %v377_v17, 0.0  ;;  %v381_v21 = vmul.f32 0.1, %v377_v17  ;;  %v1166_v25 = vpack.c.bf16 %v928_v19, %v926_v18 }
 0x226   :  { %v382_v26 = vsel %vm380_vm2, %v377_v17, %v381_v21  ;;  %v1164_v17 = vpack.c.bf16 %v929_v15, %v927_v13  ;;  %v931_v21 = vld [vmem:[#allocation7 + $0x1a8] sm:$0xff] }
 0x227   :  { %1075 = vmatmul.mubr.msk.f32.vlgmr.msra.gmra.mrb[2].mxu1 %vm399_vm3, %v382_v26 }
 0x228   :  { %1135 = vmatpush1.bf16.msra.mxu1 %v1134_v22  ;;  %649 = vmatprep.mubr.f32.mxu1 %v1352_v39  ;;  %v933_v22 = vld [vmem:[#allocation7 + $0x1b8] sm:$0xff] }
 0x229   :  { %1137 = vmatprep.subr.bf16.mxu1 %v1136_v23  ;;  %v847_v23 = vpop.permute.xlu1 %846  ;;  %v1168_v26 = vpack.c.bf16 %v933_v22, %v931_v21 }
 0x22c   :  { %1139 = vmatpush1.bf16.msra.mxu1 %v1138_v29  ;;  %v935_v29 = vld [vmem:[#allocation7 + $0x1c8] sm:$0xff] }
 0x22d   :  { %1141 = vmatprep.subr.bf16.mxu1 %v1140_v30  ;;  %v937_v30 = vld [vmem:[#allocation7 + $0x1d8] sm:$0xff] }
 0x22e   :  { %v1172_v32 = vpack.c.bf16 %v937_v30, %v935_v29 }
 0x230   :  { %1143 = vmatpush1.bf16.msra.mxu1 %v1142_v35  ;;  %v1174_v35 = vpack.c.bf16 %v936_v34, %v934_v33 }
 0x231   :  { %1145 = vmatprep.subr.bf16.mxu1 %v1144_v36  ;;  %v939_v36 = vld [vmem:[#allocation7 + $0x1e8] sm:$0xff] }
 0x232   :  { %v1176_v40 = vpack.c.bf16 %v941_v38, %v939_v36 }
 0x234   :  { %1147 = vmatpush1.bf16.msra.mxu1 %v1146_v41  ;;  %v938_v41 = vld [vmem:[#allocation7 + $0x1e0] sm:$0xff] }
 0x235   :  { %1106 = vmatprep.subr.mxu1 %v1352_v39 }
 0x294   :  { %v558_v43 = vpop.f32.mrb[4].mxu0 }
 0x295   :  { %v559_v44 = vadd.f32 %v558_v43, %v483_v42  ;;  %v1105_v45 = vpop.f32.mrb[5].mxu0  ;;  %v940_v42 = vld [vmem:[#allocation7 + $0x1f0] sm:$0xff] }
 0x296   :  { %v1178_v43 = vpack.c.bf16 %v940_v42, %v938_v41 }
 0x297   :  { %vm562_vm4 = vcmp.gt.f32.partialorder %v559_v44, 0.0  ;;  %v563_v48 = vmul.f32 0.1, %v559_v44 }
 0x299   :  { %v564_v53 = vsel %vm562_vm4, %v559_v44, %v563_v48  ;;  %v843_v44 = vpop.permute.xlu0 %842 }
 0x29a   :  { %1079 = vmatmul.mubr.msk.f32.vlgmr.msra.gmra.mrb[2].mxu1 %vm399_vm3, %v564_v53 }
 0x29b   :  { %1107 = vmatpush3.msra.mxu1 %v1445_v50  ;;  %1108 = vmatprep.mubr.msk.f32.mxu1 %vm1353_vm0, %v1352_v39  ;;  %v1156_v50 = vpack.c.bf16 %v755_v62, %v753_v61 }
 0x29c   :  { %1149 = vmatprep.subr.bf16.mxu1 %v1148_v49  ;;  %v297_v49 = vmul.f32 0.5, %v1432_v37 }
 0x29e   :  { %1109 = vmatmul.mubr.msk.f32.vlgmr.msra.gmra.mrb[4].mxu1 %vm306_vm1, %v1080_v56 }
 0x29f   :  { %1151 = vmatpush1.bf16.msra.mxu1 %v1150_v57  ;;  %827 = vmatprep.mubr.f32.mxu1 %v1352_v39 }
 0x2a0   :  { %1153 = vmatprep.subr.bf16.mxu1 %v1152_v58 }
 0x2a3   :  { %1155 = vmatpush1.bf16.msra.mxu1 %v1154_v63 }
 0x2a4   :  { %1157 = vmatprep.subr.bf16.mxu1 %v1156_v50 }
 0x2a7   :  { %1159 = vmatpush1.bf16.msra.mxu1 %v1158_v2 }
 0x2a8   :  { %1161 = vmatprep.subr.bf16.mxu1 %v1160_v5 }
 0x2ab   :  { %1163 = vmatpush1.bf16.msra.mxu1 %v1162_v8 }
 0x2ac   :  { %1111 = vmatprep.subr.mxu1 %v1352_v39 }
 0x371   :  { %v736_v10 = vpop.f32.mrb[4].mxu1 }
 0x372   :  { %v737_v11 = vadd.f32 %v736_v10, %v665_v9  ;;  %v1110_v12 = vpop.f32.mrb[5].mxu1 }
 0x374   :  { %vm740_vm5 = vcmp.gt.f32.partialorder %v737_v11, 0.0  ;;  %v741_v16 = vmul.f32 0.1, %v737_v11 }
 0x376   :  { %v742_v20 = vsel %vm740_vm5, %v737_v11, %v741_v16 }
 0x377   :  { %1083 = vmatmul.mubr.msk.f32.vlgmr.msra.gmra.mrb[2].mxu1 %vm399_vm3, %v742_v20 }
 0x378   :  { %1112 = vmatpush3.msra.mxu1 %v847_v23  ;;  %1113 = vmatprep.mubr.msk.f32.mxu1 %vm1353_vm0, %v1352_v39 }
 0x379   :  { %1165 = vmatprep.subr.bf16.mxu1 %v1164_v17 }
 0x37b   :  { %1114 = vmatmul.mubr.msk.f32.vlgmr.msra.gmra.mrb[6].mxu1 %vm306_vm1, %v1084_v24 }
 0x37c   :  { %1167 = vmatpush1.bf16.msra.mxu1 %v1166_v25  ;;  %1009 = vmatprep.mubr.f32.mxu1 %v1352_v39 }
 0x37d   :  { %1169 = vmatprep.subr.bf16.mxu1 %v1168_v26 }
 0x380   :  { %1171 = vmatpush1.bf16.msra.mxu1 %v1170_v31 }
 0x381   :  { %1173 = vmatprep.subr.bf16.mxu1 %v1172_v32 }
 0x384   :  { %1175 = vmatpush1.bf16.msra.mxu1 %v1174_v35 }
 0x385   :  { %1177 = vmatprep.subr.bf16.mxu1 %v1176_v40 }
 0x388   :  { %1179 = vmatpush1.bf16.msra.mxu1 %v1178_v43 }
 0x44e   :  { %v918_v45 = vpop.f32.mrb[6].mxu1 }
 0x44f   :  { %v919_v46 = vadd.f32 %v918_v45, %v843_v44  ;;  %v1115_v39 = vpop.f32.mrb[7].mxu1 }
 0x451   :  { %vm922_vm6 = vcmp.gt.f32.partialorder %v919_v46, 0.0  ;;  %v923_v47 = vmul.f32 0.1, %v919_v46 }
 0x453   :  { %v924_v48 = vsel %vm922_vm6, %v919_v46, %v923_v47 }
 0x454   :  { %1087 = vmatmul.mubr.msk.f32.vlgmr.msra.gmra.mrb[2].mxu1 %vm399_vm3, %v924_v48 }
 0x527   :  { %v1011_v52 = vpop.f32.mrb[2].mxu1 }
 0x528   :  { %v1180_v53 = vadd.f32 %v1011_v52, %v297_v49  ;;  %v1013_v54 = vpop.f32.mrb[3].mxu1 }
 0x529   :  { %v1181_v55 = vadd.f32 %v1013_v54, %v298_v51 }
 0x52a   :  { %vm1018_vm7 = vcmp.gt.f32.partialorder %v1180_v53, 0.0  ;;  %v1020_v56 = vmul.f32 0.1, %v1180_v53 }
 0x52b   :  { %vm1019_vm8 = vcmp.gt.f32.partialorder %v1181_v55, 0.0  ;;  %v1021_v57 = vmul.f32 0.1, %v1181_v55 }
 0x52c   :  { %v1022_v58 = vsel %vm1018_vm7, %v1180_v53, %v1020_v56 }
 0x52d   :  { %v1023_v59 = vsel %vm1019_vm8, %v1181_v55, %v1021_v57  ;;  %1024 = vst [vmem:[#allocation8] sm:$0xff] %v1022_v58 }
 0x52e   :  { %1025 = vst [vmem:[#allocation8 + $0x8] sm:$0xff] %v1023_v59 }
 0x52f   :  { %1327 = shalt.err (!%p1324_p0)
}
 0x530   :  { %s1328_s24 = scalar_lea.hbm %s1501_s5, 256 }
 0x531   :  { %p1329_p1 = scmp.ne.s32.totalorder %s1501_s5, %s1328_s24  ;;  %p1332_p2 = scmp.lt.u32.totalorder %s1328_s24, %s1501_s5 }
 0x533   :  { %p1334_p3 = pnand %p1332_p2, %p1329_p1 }
 0x535   :  { %1337 = shalt.err (!%p1334_p3)
}
 0x536   :  { %1035 = dma.vmem_to_hbm [thread:$0]  %s1033_s20, 256, %s1501_s5, [#allocation4]  }
 0x537   :  { %1342 = dma.done.wait [#allocation4], 256  }
 0x538   :  { %1343 = vsyncadd [#allocation4], 4294967040 }
 0x539   :  { %1039 = vsyncpa [#allocation3], 1 }
 0x53a   :  { %1040 = vsyncpa [#allocation6], 1 }
 0x53b   :  { %1041 = vsyncpa [#allocation4], 1 }

</bundles_post_ra>
